<compile_context>
chip_gen: v7x
topology: tpu7x:2x2x1
jax: 0.10.0
libtpu: 0.0.40
codegen_flags: <defaults>
</compile_context>

<pallas_src>
import math

import jax
import jax.numpy as jnp
from jax.experimental import pallas as pl
from jax.experimental.pallas import tpu as pltpu


_VMEM_BUDGET = 40 * 1024 * 1024  # conservative cross-generation cap (v7x-safe)


def _round_up(x, m):
    return ((x + m - 1) // m) * m


def _tiles_for(dim, cap, align):
    """Pick (tile, padded_dim). Use the full dim (no padding) when it fits."""
    if dim <= cap:
        return dim, dim
    t = max(align, (cap // align) * align)
    return t, _round_up(dim, t)


def _adaptive_linear_kernel_acc(idx_ref, x_ref, w_ref, b_ref, o_ref, acc_ref):
    # Multi Fin-tile path: f32 accumulator over the trailing reduction axis.
    k = pl.program_id(3)

    @pl.when(k == 0)
    def _():
        acc_ref[...] = jnp.zeros_like(acc_ref)

    acc_ref[...] += jnp.dot(x_ref[0], w_ref[0],
                            preferred_element_type=jnp.float32)

    @pl.when(k == pl.num_programs(3) - 1)
    def _():
        o_ref[0] = (acc_ref[...] + b_ref[0]).astype(o_ref.dtype)


def _adaptive_linear_kernel_single_k(idx_ref, x_ref, w_ref, b_ref, o_ref):
    # Single Fin-tile path: no scratch, no phases, one lane-dense store.
    o_ref[0] = (jnp.dot(x_ref[0], w_ref[0],
                        preferred_element_type=jnp.float32)
                + b_ref[0]).astype(o_ref.dtype)


def dummy_linear_with_channel(x, weight, bias, indices, *,
                              tile_n=1024, tile_fout=512, tile_fin=1024,
                              compute_dtype=None, sort_by_channel=True):
    """x: (B, N, Fin), weight: (C, Fin, Fout), bias: (C, 1, Fout),
    indices: (B,) int  ->  (B, N, Fout)."""
    B, N, Fin = x.shape
    C, Fin_w, Fout = weight.shape
    assert Fin_w == Fin
    out_dtype = x.dtype
    out_itemsize = jnp.dtype(out_dtype).itemsize

    indices = indices.astype(jnp.int32)

    # Optional MXU dtype (keep f32 accumulation / bias add).
    if compute_dtype is not None:
        x = x.astype(compute_dtype)
        weight = weight.astype(compute_dtype)
    itemsize = jnp.dtype(x.dtype).itemsize
    sub = 32 // itemsize          # sublane multiple: 8 (f32), 16 (bf16), 32 (i8)

    # Sort batches by channel so runs of equal channels are adjacent; the
    # pipeline then skips re-DMA of an unchanged weight block between steps.
    do_sort = sort_by_channel and B > 1
    if do_sort:
        perm = jnp.argsort(indices)          # stable
        inv_perm = jnp.argsort(perm)
        x = jnp.take(x, perm, axis=0)
        indices = jnp.take(indices, perm, axis=0)

    # Tile selection: maximise rows first (weight reuse), lane-aligned widths.
    tn, Np = _tiles_for(N, tile_n, sub)
    tf, Fp = _tiles_for(Fout, tile_fout, 128)
    tk, Kp = _tiles_for(Fin, tile_fin, 128)

    def _footprint(tn_, tf_, tk_, multi_k):
        per_buf = ((tn_ * tk_ + tk_ * tf_) * itemsize
                   + tf_ * 4 + tn_ * tf_ * out_itemsize)
        return 2 * per_buf + (tn_ * tf_ * 4 if multi_k else 0)

    # Shrink reduction chunk, then output width, then rows, to fit VMEM budget.
    while _footprint(tn, tf, tk, Kp > tk) > _VMEM_BUDGET:
        if tk > 128:
            tk = max(128, (tk // 2 // 128) * 128)
            Kp = _round_up(Fin, tk)
        elif tf > 128:
            tf = max(128, (tf // 2 // 128) * 128)
            Fp = _round_up(Fout, tf)
        elif tn > sub:
            tn = max(sub, (tn // 2 // sub) * sub)
            Np = _round_up(N, tn)
        else:
            break

    multi_k = (Kp // tk) > 1

    # Pad only when a dim is actually tiled below its full extent.
    if (Np, Kp) != (N, Fin):
        x = jnp.pad(x, ((0, 0), (0, Np - N), (0, Kp - Fin)))
    if (Kp, Fp) != (Fin, Fout):
        weight = jnp.pad(weight, ((0, 0), (0, Kp - Fin), (0, Fp - Fout)))
    if Fp != Fout:
        bias = jnp.pad(bias, ((0, 0), (0, 0), (0, Fp - Fout)))

    cost = pl.CostEstimate(
        flops=2 * B * N * Fin * Fout,
        transcendentals=0,
        bytes_accessed=(B * N * Fin * itemsize          # x
                        + B * Fin * Fout * itemsize     # gathered weight
                        + B * Fout * 4                  # gathered bias
                        + B * N * Fout * out_itemsize)) # out

    vmem_limit = int(min(56 << 20,
                         max(32 << 20,
                             _footprint(tn, tf, tk, multi_k) + (8 << 20))))

    if multi_k:
        kernel = _adaptive_linear_kernel_acc
        grid = (B, Np // tn, Fp // tf, Kp // tk)
        grid_spec = pltpu.PrefetchScalarGridSpec(
            num_scalar_prefetch=1,
            grid=grid,
            in_specs=[
                pl.BlockSpec((1, tn, tk), lambda b, n, f, k, idx: (b, n, k)),
                pl.BlockSpec((1, tk, tf),
                             lambda b, n, f, k, idx: (idx[b], k, f)),
                pl.BlockSpec((1, 1, tf),
                             lambda b, n, f, k, idx: (idx[b], 0, f)),
            ],
            out_specs=pl.BlockSpec((1, tn, tf),
                                   lambda b, n, f, k, idx: (b, n, f)),
            scratch_shapes=[pltpu.VMEM((tn, tf), jnp.float32)],
        )
        sem = ("parallel", "parallel", "parallel", "arbitrary")
    else:
        kernel = _adaptive_linear_kernel_single_k
        grid = (B, Np // tn, Fp // tf)
        grid_spec = pltpu.PrefetchScalarGridSpec(
            num_scalar_prefetch=1,
            grid=grid,
            in_specs=[
                pl.BlockSpec((1, tn, tk), lambda b, n, f, idx: (b, n, 0)),
                pl.BlockSpec((1, tk, tf), lambda b, n, f, idx: (idx[b], 0, f)),
                pl.BlockSpec((1, 1, tf), lambda b, n, f, idx: (idx[b], 0, f)),
            ],
            out_specs=pl.BlockSpec((1, tn, tf),
                                   lambda b, n, f, idx: (b, n, f)),
        )
        sem = ("parallel", "parallel", "parallel")

    out_padded = pl.pallas_call(
        kernel,
        out_shape=jax.ShapeDtypeStruct((B, Np, Fp), out_dtype),
        grid_spec=grid_spec,
        compiler_params=pltpu.CompilerParams(
            dimension_semantics=sem, vmem_limit_bytes=vmem_limit),
        cost_estimate=cost,
    )(indices, x, weight, bias)

    out = out_padded
    if (Np, Fp) != (N, Fout):
        out = out[:, :N, :Fout]
    if do_sort:
        out = jnp.take(out, inv_perm, axis=0)
    return out


if __name__ == "__main__":
    # Small shapes consistent with the module.
    in_features = 32
    out_features = 32
    n_channels = 4
    B = 2        # number of selected channels (batch of bmm)
    N = 8        # rows per channel

    key = jax.random.PRNGKey(0)
    k_w, k_b, k_x, k_i = jax.random.split(key, 4)

    # init_weights(): uniform(-bound, bound), bound = sqrt(6/in_features)/30
    bound = math.sqrt(6.0 / in_features) / 30.0
    weight = jax.random.uniform(
        k_w, (n_channels, in_features, out_features),
        minval=-bound, maxval=bound, dtype=jnp.float32)
    bias = jax.random.uniform(
        k_b, (n_channels, 1, out_features),
        minval=-bound, maxval=bound, dtype=jnp.float32)

    x = jax.random.normal(k_x, (B, N, in_features), dtype=jnp.float32)
    indices = jax.random.randint(k_i, (B,), 0, n_channels, dtype=jnp.int32)

    # jit the whole forward so sort/pad/slice fuse around the Pallas call.
    fwd = jax.jit(lambda x_, w_, b_, i_: dummy_linear_with_channel(x_, w_, b_, i_))
    out = jax.block_until_ready(fwd(x, weight, bias, indices))

    # Reference check (plain JAX) for the bmm-with-gathered-weights semantics.
    ref = jnp.einsum("bnf,bfo->bno", x, weight[indices]) + bias[indices]
    assert out.shape == (B, N, out_features)
    assert jnp.allclose(out, ref, atol=1e-5, rtol=1e-5)

    print("KERNEL_OK")
</pallas_src>

<mosaic_0001>
module attributes {stable_mosaic.version = 11 : i64} {
  func.func @_adaptive_linear_kernel_single_k(%arg0: i32, %arg1: i32, %arg2: i32, %arg3: memref<2xi32, #tpu.memory_space<smem>>, %arg4: memref<1x8x32xf32, #tpu.memory_space<vmem>>, %arg5: memref<1x32x32xf32, #tpu.memory_space<vmem>>, %arg6: memref<1x1x32xf32, #tpu.memory_space<vmem>>, %arg7: memref<1x8x32xf32, #tpu.memory_space<vmem>>) attributes {dimension_semantics = [#tpu.dimension_semantics<parallel>, #tpu.dimension_semantics<parallel>, #tpu.dimension_semantics<parallel>], iteration_bounds = array<i64: 2, 1, 1>, scalar_prefetch = 1 : i64, scratch_operands = 0 : i64, tpu.core_type = #tpu.core_type<tc>, window_params = [{transform_indices = @transform_0, window_bounds = array<i64: 1, 8, 32>}, {transform_indices = @transform_1, window_bounds = array<i64: 1, 32, 32>}, {transform_indices = @transform_2, window_bounds = array<i64: 1, 1, 32>}, {transform_indices = @transform_3, window_bounds = array<i64: 1, 8, 32>}]} {
    %c0 = arith.constant 0 : index
    %c0_0 = arith.constant 0 : index
    %c0_1 = arith.constant 0 : index
    %0 = vector.load %arg4[%c0, %c0_0, %c0_1] : memref<1x8x32xf32, #tpu.memory_space<vmem>>, vector<1x8x32xf32>
    %1 = vector.shape_cast %0 : vector<1x8x32xf32> to vector<8x32xf32>
    %c0_2 = arith.constant 0 : index
    %c0_3 = arith.constant 0 : index
    %c0_4 = arith.constant 0 : index
    %2 = vector.load %arg5[%c0_2, %c0_3, %c0_4] : memref<1x32x32xf32, #tpu.memory_space<vmem>>, vector<1x32x32xf32>
    %3 = vector.shape_cast %2 : vector<1x32x32xf32> to vector<32x32xf32>
    %cst = arith.constant dense<0.000000e+00> : vector<8x32xf32>
    %4 = tpu.matmul %1, %3, %cst {dimension_numbers = #tpu.dot_dimension_numbers<[1], [0], [0], [1], [0, 0, 1, 1], [], []>} : vector<8x32xf32>, vector<32x32xf32>, vector<8x32xf32> -> vector<8x32xf32>
    %c0_5 = arith.constant 0 : index
    %c0_6 = arith.constant 0 : index
    %c0_7 = arith.constant 0 : index
    %5 = vector.load %arg6[%c0_5, %c0_6, %c0_7] : memref<1x1x32xf32, #tpu.memory_space<vmem>>, vector<1x1x32xf32>
    %6 = vector.shape_cast %5 : vector<1x1x32xf32> to vector<1x32xf32>
    %7 = vector.broadcast %6 : vector<1x32xf32> to vector<8x32xf32>
    %8 = arith.addf %4, %7 : vector<8x32xf32>
    %c0_8 = arith.constant 0 : index
    %c0_9 = arith.constant 0 : index
    %c0_10 = arith.constant 0 : index
    %9 = vector.load %arg7[%c0_8, %c0_9, %c0_10] : memref<1x8x32xf32, #tpu.memory_space<vmem>>, vector<1x8x32xf32>
    %10 = vector.shape_cast %9 : vector<1x8x32xf32> to vector<8x32xf32>
    %11 = vector.shape_cast %8 : vector<8x32xf32> to vector<1x8x32xf32>
    tpu.vector_store %arg7[%c0_8, %c0_9, %c0_10], %11 {strides = array<i32>} : memref<1x8x32xf32, #tpu.memory_space<vmem>>, vector<1x8x32xf32>,
    return
  }
  func.func @transform_0(%arg0: i32, %arg1: i32, %arg2: i32, %arg3: memref<2xi32, #tpu.memory_space<smem>>) -> (i32, i32, i32) {
    %c0_i32 = arith.constant 0 : i32
    %c0_i32_0 = arith.constant 0 : i32
    return %arg0, %arg1, %c0_i32 : i32, i32, i32
  }
  func.func @transform_1(%arg0: i32, %arg1: i32, %arg2: i32, %arg3: memref<2xi32, #tpu.memory_space<smem>>) -> (i32, i32, i32) {
    %0 = arith.index_cast %arg0 : i32 to index
    %1 = memref.load %arg3[%0] : memref<2xi32, #tpu.memory_space<smem>>
    %c0_i32 = arith.constant 0 : i32
    %c0_i32_0 = arith.constant 0 : i32
    return %1, %c0_i32, %arg2 : i32, i32, i32
  }
  func.func @transform_2(%arg0: i32, %arg1: i32, %arg2: i32, %arg3: memref<2xi32, #tpu.memory_space<smem>>) -> (i32, i32, i32) {
    %0 = arith.index_cast %arg0 : i32 to index
    %1 = memref.load %arg3[%0] : memref<2xi32, #tpu.memory_space<smem>>
    %c0_i32 = arith.constant 0 : i32
    %c0_i32_0 = arith.constant 0 : i32
    return %1, %c0_i32, %arg2 : i32, i32, i32
  }
  func.func @transform_3(%arg0: i32, %arg1: i32, %arg2: i32, %arg3: memref<2xi32, #tpu.memory_space<smem>>) -> (i32, i32, i32) {
    %c0_i32 = arith.constant 0 : i32
    return %arg0, %arg1, %arg2 : i32, i32, i32
  }
}

</mosaic_0001>

<bundles_post_ra>
// kernel: _lambda_.1
= control target key start
LH: loop header
LB: loop body
LE: loop exit
PB: predicated region body
PF: predicated region fallthrough
CT: control target
= control target key end

     0   :  { %s672_s0 = inlined_call_operand.vmem [shape: s32[2], index: 0, kind: input, shape index: {}]   ;;  %s673_s1 = inlined_call_operand.vmem [shape: f32[2,8,32], index: 1, kind: input, shape index: {}]   ;;  %s674_s2 = inlined_call_operand.vmem [shape: f32[4,32,32], index: 2, kind: input, shape index: {}]   ;;  %s675_s3 = inlined_call_operand.vmem [shape: f32[4,1,32], index: 3, kind: input, shape index: {}]   ;;  %s676_s4 = inlined_call_operand.vmem [shape: f32[2,8,32], index: 4, kind: output, shape index: {}]  }
   0x1   :  { %s9_s17 = sshll.u32 %s672_s0, 4  ;;  %s10_s17 = int_to_ptr.vmem [resolvable:$true] %s9_s17 }
   0x2   :  { %s557_s18 = scalar_lea.vmem %s10_s17, 16  ;;  %p562_p1 = scmp.lt.s32.totalorder %s10_s17, %s10_s17 }
   0x3   :  { %p558_p0 = scmp.ne.s32.totalorder %s10_s17, %s557_s18  ;;  %p563_p2 = scmp.lt.s32.totalorder %s557_s18, %s557_s18 }
   0x5   :  { %p564_p3 = por %p563_p2, %p562_p1 }
   0x7   :  { %p565_p4 = pnand %p564_p3, %p558_p0 }
   0x9   :  { %568 = shalt.err (!%p565_p4)  }
   0xa   :  { %s595_s19 = smov [#allocation3]  }
   0xb   :  { %12 = dma.vmem_to_smem %s10_s17, 16, %s595_s19, [#allocation2] }
   0xc   :  { %581 = dma.done.wait [#allocation2], 16 }
   0xd   :  { %582 = vsyncadd [#allocation2], 4294967280 }
   0xe   :  { %14 = sfence }
   0xf   :  { %s627_s20 = smov 0   ;;  %s629_s21 = smov 0  }
  0x10   :  { %s631_s22 = smov 0  }
  0x11 LB: > { %s39_s0 = sadd.s32 1, %s589_s21  ;;  %p497_p5 = scmp.ge.s32.totalorder %s593_s22, 1  ;;  %s593_s22 = sphi %s631_s22, %s20_s22   ;;  %s589_s21 = sphi %s629_s21, %s678_s21   ;;  %s585_s20 = sphi %s627_s20, %s677_s20  }
  0x12   : > { %p41_p6 = scmp.ge.s32.totalorder %s39_s0, 2  ;;  %p207_p7 = scmp.lt.s32.totalorder %s593_s22, 3 }
  0x14   : > { %s680_s0 = smov (%p41_p6, %s39_s0), 0  ;;  %p208_p8 = pnand %p497_p5, %p207_p7 }
  0x15   : > { %s261_s23 = sld [smem:[#allocation3 + %s585_s20]] (!%p208_p8)  ;;  %v596_v0 = vmov (!%p208_p8), 0.0|0.0   ;;  %vm597_vm0 = vmmov (!%p208_p8), 0   ;;  %v598_v1 = vmov (!%p208_p8), 0.0   ;;  %p254_p9 = scmp.lt.s32.totalorder (!%p208_p8), %s585_s20, 1  ;;  %vm301_vm1 = vcmask (!%p208_p8), 261120  }
  0x16   : > { %211 = sbr.rel (%p208_p8) target bundleno = 258 (0x102), region = 32  ;;  %523 = vmatprep.subr.bf16.mxu0 (!%p208_p8), %v596_v0  ;;  %520 = vmatprep.mubr.msk.f32.mxu0 (!%p208_p8), %vm597_vm0, %v598_v1  ;;  %s271_s7 = sld [smem:[#allocation3 + %s585_s20]] (!%p208_p8) }
  0x1b   : > { %p262_p10 = scmp.lt.s32.totalorder (!%p208_p8), %s261_s23, 3 }
  0x1c   : > { %p272_p11 = scmp.lt.s32.totalorder (!%p208_p8), %s271_s7, 3 }
  0x1d   : > { %s682_s23 = smov (!%p262_p10, %s261_s23), 3 }
  0x1e   : > { %s255_s24 = scalar_select %p254_p9, %s585_s20, 1 }
  0x1f   : > { %s506_s25 = sshll.u32 %s682_s23, 5  ;;  %s684_s7 = smov (!%p272_p11, %s271_s7), 3 }
  0x20   : > { %s269_s28 = scalar_lea.vmem %s674_s2, %s506_s25  ;;  %s498_s29 = sshll.u32 %s255_s24, 3 }
  0x21   : > { %v290_v2 = vld [vmem:[%s269_s28] sm:$0xff]  ;;  %v291_v3 = vld [vmem:[%s269_s28 + $0x8] sm:$0xff]  ;;  %v292_v4 = vld [vmem:[%s269_s28 + $0x10] sm:$0xff]  ;;  %s260_s6 = scalar_lea.vmem %s673_s1, %s498_s29  ;;  %s277_s10 = scalar_lea.vmem %s675_s3, %s684_s7 }
  0x22   : > { %v524_v5 = vpack.c.bf16 %v291_v3, %v290_v2  ;;  %v293_v6 = vld [vmem:[%s269_s28 + $0x18] sm:$0xff]  ;;  %v289_v8 = vld [vmem:[%s260_s6] sm:$0xff]  ;;  %s288_s13 = scalar_lea.vmem %s676_s4, %s498_s29 }
  0x23   : > { %v527_v7 = vpack.c.bf16 %v293_v6, %v292_v4  ;;  %v502_v9 = vld [vmem:[%s277_s10] ss:$0 sm:$0xff] }
  0x24   : > { %525 = vmatpush3.bf16.msra.mxu0 %v524_v5 }
  0x25   : > { %526 = vmatprep.subr.bf16.mxu0 %v596_v0 }
  0x28   : > { %528 = vmatpush3.bf16.msra.mxu0 %v527_v7 }
  0x2b   : > { %521 = vmatmul.mubr.msk.f32.vlgmr.msra.gmra.mrb[0].mxu0 %vm301_vm1, %v289_v8 }
  0xfe   : > { %v371_v10 = vpop.f32.mrb[0].mxu0 }
  0xff   : > { %v372_v11 = vadd.f32 %v502_v9, %v371_v10  ;;  %v522_v12 = vpop.f32.mrb[1].mxu0 }
 0x101   : > { %375 = vst.msk [vmem:[%s288_s13] sm:$0xff] %vm301_vm1, %v372_v11 }
 0x102 PF: > { %s20_s22 = sadd.s32 1, %s593_s22   ;;  %s677_s20 = smov %s589_s21 }
 0x103   : > { %p17_p12 = scmp.ge.s32.totalorder %s20_s22, 4   ;;  %s678_s21 = smov %s680_s0 }
 0x105   :  { %19 = sbr.rel (!%p17_p12) target bundleno = 17 (0x11), region = 68 }

</bundles_post_ra>
